<compile_context>
chip_gen: v6e
topology: v6e:2x2x1
jax: 0.10.0
libtpu: 0.0.40
codegen_flags: <defaults>
</compile_context>

<pallas_src>
import functools
import math

import jax
import jax.numpy as jnp
from jax.experimental import pallas as pl
from jax.experimental.pallas import tpu as pltpu


def autopad(k, p=None):
    if p is None:
        p = k // 2 if isinstance(k, int) else [v // 2 for v in k]
    return p


def _classify_kernel(x_ref, wt_ref, o_ref, *, inv_hw):
    """One image per grid step: global-avg-pool + 1x1 conv, fully fused."""
    x = x_ref[0]                                            # (C1, HW) f32, HW on lanes
    pooled = jnp.sum(x, axis=1, keepdims=True) * inv_hw     # (C1, 1): adaptive avg pool -> 1x1
    # 1x1 conv of the pooled vector: out(1, C2) = pooled^T @ W^T.
    # M = 1, so a VPU broadcast-multiply + sublane reduce beats feeding the MXU.
    o_ref[0] = jnp.sum(pooled * wt_ref[...], axis=0, keepdims=True)   # (1, C2), lane-dense


def classify_forward(x, w_eff):
    """x: (B, C1, H, W), w_eff: (C2, C1) dense effective 1x1-conv weight -> (B, C2)."""
    x = jnp.asarray(x, jnp.float32)
    b, c1, h, w = x.shape
    hw = h * w
    x2 = x.reshape(b, c1, hw)                 # free reshape; spatial axis -> lanes in-kernel
    wt = jnp.asarray(w_eff, jnp.float32).T    # (C1, C2): C2 on lanes -> lane-dense output
    c2 = wt.shape[1]

    kernel = functools.partial(_classify_kernel, inv_hw=1.0 / float(hw))
    out = pl.pallas_call(
        kernel,
        out_shape=jax.ShapeDtypeStruct((b, 1, c2), jnp.float32),
        grid=(b,),
        in_specs=[
            pl.BlockSpec((1, c1, hw), lambda i: (i, 0, 0)),   # one image per grid step
            pl.BlockSpec((c1, c2), lambda i: (0, 0)),         # weight resident across steps
        ],
        out_specs=pl.BlockSpec((1, 1, c2), lambda i: (i, 0, 0)),
        compiler_params=pltpu.CompilerParams(dimension_semantics=("parallel",)),
    )(x2, wt)
    return out.reshape(b, c2)


class Classify:
    """JAX/Pallas equivalent of YOLOv5 models.common.Classify (aap -> 1x1 conv -> flatten)."""

    def __init__(self, c1, c2, k=1, s=1, p=None, g=1, *, key=None):
        assert isinstance(k, int) and k % 2 == 1, "only odd square kernels supported"
        assert c1 % g == 0 and c2 % g == 0
        pad = autopad(k, p)
        # TODO(synk): only autopad (p = k//2) is implemented; explicit non-default padding
        # would change which conv taps see the 1x1 pooled pixel.
        assert pad == k // 2, "only autopad (p = k//2) supported"
        if key is None:
            key = jax.random.PRNGKey(0)
        fan_in = (c1 // g) * k * k
        bound = 1.0 / math.sqrt(fan_in)
        # PyTorch Conv2d weight layout (c2, c1//g, k, k), kaiming-uniform init.
        self.weight = jax.random.uniform(key, (c2, c1 // g, k, k), jnp.float32,
                                         minval=-bound, maxval=bound)
        self.c1, self.c2, self.k, self.g = c1, c2, k, g

        # Effective dense (c2, c1) weight: on the 1x1 pooled map only the kernel's centre
        # tap touches data (every other tap hits zero padding); groups become block-diagonal.
        centre = self.weight[:, :, k // 2, k // 2]            # (c2, c1//g)
        if g == 1:
            w_eff = centre
        else:
            w_eff = jnp.zeros((c2, c1), jnp.float32)
            cin_g, cout_g = c1 // g, c2 // g
            for j in range(g):
                w_eff = w_eff.at[j * cout_g:(j + 1) * cout_g,
                                 j * cin_g:(j + 1) * cin_g].set(
                    centre[j * cout_g:(j + 1) * cout_g])
        self.w_eff = w_eff                                    # (c2, c1)

    def __call__(self, x):
        xs = x if isinstance(x, (list, tuple)) else [x]
        # conv(cat([aap(y) for y in xs], dim=1)) == sum_i conv_slice_i(aap(xs[i])),
        # so a list input reuses the same fused kernel with a sliced weight.
        out, off = None, 0
        for xi in xs:
            ci = int(xi.shape[1])
            contrib = classify_forward(xi, self.w_eff[:, off:off + ci])
            out = contrib if out is None else out + contrib
            off += ci
        assert off == self.c1, "sum of input channels must equal c1"
        return out


if __name__ == "__main__":
    key = jax.random.PRNGKey(0)
    kx, kw, kxa, kxb, kw2 = jax.random.split(key, 5)

    # Single-tensor input: (B, C1, H, W) -> (B, C2)
    B, C1, C2, H, W = 2, 32, 10, 16, 16
    x = jax.random.normal(kx, (B, C1, H, W), jnp.float32)
    model = Classify(C1, C2, key=kw)
    out = jax.block_until_ready(model(x))
    assert out.shape == (B, C2)
    ref = jnp.mean(x, axis=(2, 3)) @ model.w_eff.T
    assert jnp.allclose(out, ref, rtol=1e-4, atol=1e-4), "mismatch vs reference (single input)"

    # List input (reference concatenates pooled features along channels before the conv).
    xa = jax.random.normal(kxa, (B, 24, 8, 8), jnp.float32)
    xb = jax.random.normal(kxb, (B, 8, 16, 16), jnp.float32)
    model2 = Classify(32, 7, key=kw2)
    out2 = jax.block_until_ready(model2([xa, xb]))
    assert out2.shape == (B, 7)
    pooled = jnp.concatenate([jnp.mean(xa, axis=(2, 3)), jnp.mean(xb, axis=(2, 3))], axis=1)
    ref2 = pooled @ model2.w_eff.T
    assert jnp.allclose(out2, ref2, rtol=1e-4, atol=1e-4), "mismatch vs reference (list input)"

    print("KERNEL_OK")
</pallas_src>

<mosaic_0001>
module attributes {stable_mosaic.version = 11 : i64} {
  func.func @_classify_kernel(%arg0: i32, %arg1: memref<1x32x256xf32, #tpu.memory_space<vmem>>, %arg2: memref<32x10xf32, #tpu.memory_space<vmem>>, %arg3: memref<1x1x10xf32, #tpu.memory_space<vmem>>) attributes {dimension_semantics = [#tpu.dimension_semantics<parallel>], iteration_bounds = array<i64: 2>, scalar_prefetch = 0 : i64, scratch_operands = 0 : i64, tpu.core_type = #tpu.core_type<tc>, window_params = [{transform_indices = @transform_0, window_bounds = array<i64: 1, 32, 256>}, {pipeline_mode = #tpu.pipeline_mode<synchronous>, transform_indices = @transform_1, window_bounds = array<i64: 32, 10>}, {transform_indices = @transform_2, window_bounds = array<i64: 1, 1, 10>}]} {
    %c0 = arith.constant 0 : index
    %c0_0 = arith.constant 0 : index
    %c0_1 = arith.constant 0 : index
    %0 = vector.load %arg1[%c0, %c0_0, %c0_1] : memref<1x32x256xf32, #tpu.memory_space<vmem>>, vector<1x32x256xf32>
    %1 = vector.shape_cast %0 : vector<1x32x256xf32> to vector<32x256xf32>
    %cst = arith.constant dense<0.000000e+00> : vector<32xf32>
    %2 = vector.multi_reduction <add>, %1, %cst [1] : vector<32x256xf32> to vector<32xf32>
    %3 = vector.shape_cast %2 : vector<32xf32> to vector<32x1xf32>
    %cst_2 = arith.constant 3.906250e-03 : f32
    %4 = vector.broadcast %cst_2 : f32 to vector<32x1xf32>
    %5 = arith.mulf %3, %4 : vector<32x1xf32>
    %c0_3 = arith.constant 0 : index
    %c0_4 = arith.constant 0 : index
    %6 = vector.load %arg2[%c0_3, %c0_4] : memref<32x10xf32, #tpu.memory_space<vmem>>, vector<32x10xf32>
    %7 = vector.broadcast %5 : vector<32x1xf32> to vector<32x10xf32>
    %8 = arith.mulf %7, %6 : vector<32x10xf32>
    %cst_5 = arith.constant dense<0.000000e+00> : vector<10xf32>
    %9 = vector.multi_reduction <add>, %8, %cst_5 [0] : vector<32x10xf32> to vector<10xf32>
    %10 = vector.shape_cast %9 : vector<10xf32> to vector<1x10xf32>
    %c0_6 = arith.constant 0 : index
    %c0_7 = arith.constant 0 : index
    %c0_8 = arith.constant 0 : index
    %11 = vector.load %arg3[%c0_6, %c0_7, %c0_8] : memref<1x1x10xf32, #tpu.memory_space<vmem>>, vector<1x1x10xf32>
    %12 = vector.shape_cast %11 : vector<1x1x10xf32> to vector<1x10xf32>
    %13 = vector.shape_cast %10 : vector<1x10xf32> to vector<1x1x10xf32>
    tpu.vector_store %arg3[%c0_6, %c0_7, %c0_8], %13 {strides = array<i32>} : memref<1x1x10xf32, #tpu.memory_space<vmem>>, vector<1x1x10xf32>,
    return
  }
  func.func @transform_0(%arg0: i32) -> (i32, i32, i32) {
    %c0_i32 = arith.constant 0 : i32
    %c0_i32_0 = arith.constant 0 : i32
    %c0_i32_1 = arith.constant 0 : i32
    return %arg0, %c0_i32, %c0_i32_0 : i32, i32, i32
  }
  func.func @transform_1(%arg0: i32) -> (i32, i32) {
    %c0_i32 = arith.constant 0 : i32
    %c0_i32_0 = arith.constant 0 : i32
    %c0_i32_1 = arith.constant 0 : i32
    return %c0_i32, %c0_i32_0 : i32, i32
  }
  func.func @transform_2(%arg0: i32) -> (i32, i32, i32) {
    %c0_i32 = arith.constant 0 : i32
    %c0_i32_0 = arith.constant 0 : i32
    %c0_i32_1 = arith.constant 0 : i32
    return %arg0, %c0_i32, %c0_i32_0 : i32, i32, i32
  }
}

</mosaic_0001>

<bundles_post_ra>
// kernel: tpu_custom_call.1
= control target key start
LH: loop header
LB: loop body
LE: loop exit
PB: predicated region body
PF: predicated region fallthrough
CT: control target
= control target key end

     0   :  { %7 = vsyncpa [#allocation3], 0  ;;  %s614_s0 = inlined_call_operand.hbm [shape: f32[2,32,256], index: 0, kind: input, shape index: {}]   ;;  %s615_s1 = inlined_call_operand.vmem [shape: f32[32,10], index: 1, kind: input, shape index: {}]   ;;  %s616_s2 = inlined_call_operand.hbm [shape: f32[2,1,10], index: 2, kind: output, shape index: {}]  }
   0x1   :  { %9 = vsyncpa [#allocation3 + $0x1], 0 }
   0x2   :  { %10 = vsyncpa [#allocation4], 0 }
   0x3   :  { %12 = vsyncpa [#allocation4 + $0x1], 0  ;;  %s461_s9 = smov 0   ;;  %s463_s10 = smov 0  }
   0x4   :  { %s465_s11 = smov 0   ;;  %s467_s12 = smov 0  }
   0x5 LB: > { %s482_s13 = sadd.s32 4294967295, %s440_s12   ;;  %s288_s14 = sadd.s32 4294967294, %s440_s12   ;;  %s440_s12 = sphi %s467_s12, %s631_s12   ;;  %s436_s11 = sphi %s465_s11, %s630_s11   ;;  %s432_s10 = sphi %s463_s10, %s629_s10   ;;  %s428_s9 = sphi %s461_s9, %s628_s9  }
   0x6   : > { %s486_s15 = sadd.s32 1, %s440_s12   ;;  %s25_s16 = sadd.s32 1, %s436_s11 }
   0x7   : > { %s22_s17 = ssub.s32 %s440_s12, %s486_s15  ;;  %p32_p0 = scmp.ne.s32.totalorder %s436_s11, %s432_s10 }
   0x8   : > { %p23_p1 = scmp.eq.s32.totalorder %s22_s17, 0  ;;  %p33_p2 = scmp.eq.s32.totalorder %s440_s12, 0 }
   0x9   : > { %p38_p3 = scmp.ne.s32.totalorder %s432_s10, %s428_s9  ;;  %p39_p4 = scmp.eq.s32.totalorder %s482_s13, 0 }
   0xa   : > { %s498_s18 = scalar_select %p23_p1, %s436_s11, %s25_s16  }
   0xb   : > { %p500_p5 = por %p33_p2, %p32_p0  ;;  %p504_p6 = por %p39_p4, %p38_p3 }
   0xc   : > { %p83_p7 = scmp.eq.s32.totalorder %s482_s13, 1  ;;  %p89_p8 = scmp.eq.s32.totalorder %s288_s14, 1 }
   0xd   : > { %s620_s20 = scalar_select %p504_p6, 1, 0 }
   0xe   : > { %p312_p10 = scmp.lt.s32.totalorder %s440_s12, 2  ;;  %p511_p11 = por %p83_p7, %p32_p0 }
   0xf   : > { %p515_p12 = por %p89_p8, %p38_p3  ;;  %s112_s23 = sand.u32 1, %s436_s11  }
  0x10   : > { %s621_s21 = scalar_select %p511_p11, 1, 0 }
  0x11   : > { %s622_s22 = scalar_select %p515_p12, 1, 0 }
  0x12   : > { %s299_s24 = sshll.u32 %s440_s12, 10  ;;  %s291_s25 = sshll.u32 %s112_s23, 6 }
  0x13   : > { %s524_s28 = scalar_lea.hbm %s614_s0, %s299_s24  ;;  %s116_s29 = scalar_lea.vmem [#allocation2], %s291_s25 }
  0x14   : > { %s123_s30 = sshll.u32 %s116_s29, 4  ;;  %p528_p13 = pnand %p312_p10, %p500_p5  ;;  %s532_s30 = int_to_ptr.vmem [resolvable:$true] %s123_s30 }
  0x15   : > { %s534_s4 = scalar_lea.sflag [#allocation3], %s112_s23  ;;  %s348_s5 = scalar_lea.hbm %s524_s28, 1024 }
  0x16   : > { %p349_p0 = scmp.ne.s32.totalorder %s524_s28, %s348_s5  ;;  %p350_p1 = pneg %p528_p13 }
  0x17   : > { %s353_s8 = scalar_lea.hbm %s614_s0, 2048  ;;  %p354_p4 = scmp.lt.s32.totalorder %s524_s28, %s614_s0 }
  0x18   : > { %p351_p2 = pnand %p350_p1, %p349_p0  ;;  %p355_p5 = scmp.lt.s32.totalorder %s353_s8, %s348_s5 }
  0x1a   : > { %p352_p3 = pneg %p351_p2  ;;  %p356_p7 = por %p355_p5, %p354_p4 }
  0x1c   : > { %p357_p8 = pnand %p356_p7, %p352_p3 }
  0x1e   : > { %360 = shalt.err (!%p357_p8)
}
  0x1f   : > { %s361_s17 = scalar_lea.vmem %s532_s30, 1024  ;;  %s442_s19 = smov [#allocation2]  }
  0x20   : > { %p362_p10 = scmp.ne.s32.totalorder %s532_s30, %s361_s17  ;;  %s366_s23 = sshll.u32 %s442_s19, 4  ;;  %s367_s23 = int_to_ptr.vmem [resolvable:$false] %s366_s23 }
  0x21   : > { %s368_s24 = scalar_lea.vmem %s367_s23, 2048  ;;  %p369_p2 = scmp.lt.s32.totalorder %s532_s30, %s367_s23 }
  0x22   : > { %p364_p9 = pnand %p362_p10, %p350_p1  ;;  %p370_p12 = scmp.lt.s32.totalorder %s368_s24, %s361_s17 }
  0x24   : > { %p365_p0 = pneg %p364_p9  ;;  %p371_p11 = por %p370_p12, %p369_p2 }
  0x26   : > { %p372_p6 = pnand %p371_p11, %p365_p0 }
  0x28   : > { %375 = shalt.err (!%p372_p6)
}
  0x29   : > { %s443_s25 = smov 256   ;;  %s444_s26 = smov 16  }
  0x2a   : > { %307 = dma.hbm_to_vmem [thread:$0]  (!%p528_p13), %s524_s28, 1024, %s532_s30, %s534_s4, %s443_s25, %s443_s25, %s444_s26  }
  0x2b   : > { %p294_p9 = scmp.ge.s32.totalorder %s440_s12, 1  ;;  %p131_p1 = scmp.lt.s32.totalorder %s440_s12, 3 }
  0x2d   : > { %p132_p3 = pnand %p294_p9, %p131_p1 }
  0x2e   : > { %s558_s27 = sand.u32 (!%p132_p3), 1, %s432_s10   ;;  %p624_p6 = scmp.ne.s32.totalorder (!%p132_p3), %s620_s20, 0 }
  0x2f   : > { %135 = sbr.rel (%p132_p3) target bundleno = 234 (0xea), region = 28  ;;  %s295_s29 = sshll.u32 (!%p132_p3), %s558_s27, 6 }
  0x30   : > { %s138_s5 = scalar_lea.sflag (!%p132_p3), [#allocation3], %s558_s27  ;;  %s141_s6 = scalar_lea.vmem (!%p132_p3), [#allocation2], %s295_s29 }
  0x34   : > { %419 = dma.done.wait (%p624_p6), %s138_s5, 1024  }
  0x35   : > { %421 = vsyncadd (%p624_p6), %s138_s5, 4294966272  ;;  %v161_v0 = vld [vmem:[%s141_s6] sm:$0xff]  ;;  %v162_v1 = vld [vmem:[%s141_s6 + $0x8] sm:$0xff]  ;;  %vm193_vm0 = vcmask 80896   ;;  %s296_s16 = sshll.u32 %s482_s13, 4  ;;  %s160_s17 = scalar_lea.vmem [#allocation5], %s558_s27 }
  0x36   : > { %v165_v2 = vld [vmem:[%s141_s6 + $0x20] sm:$0xff]  ;;  %v169_v3 = vadd.f32 %v162_v1, %v161_v0  ;;  %v166_v4 = vld [vmem:[%s141_s6 + $0x28] sm:$0xff]  ;;  %v163_v5 = vld [vmem:[%s141_s6 + $0x10] sm:$0xff]  ;;  %s222_s19 = sshll.u32 %s160_s17, 4  ;;  %vm207_vm1 = vcmask 73728   ;;  %s220_s25 = scalar_lea.hbm %s616_s2, %s296_s16  ;;  %s223_s19 = int_to_ptr.vmem [resolvable:$true] %s222_s19 }
  0x37   : > { %v164_v6 = vld [vmem:[%s141_s6 + $0x18] sm:$0xff]  ;;  %v175_v7 = vadd.f32 %v166_v4, %v165_v2  ;;  %v167_v8 = vld [vmem:[%s141_s6 + $0x30] sm:$0xff]  ;;  %v185_v15 = vld [vmem:[%s615_s1] sm:$0xff]  ;;  %s210_s26 = scalar_lea.sflag [#allocation4], %s558_s27  ;;  %s376_s29 = scalar_lea.vmem %s223_s19, 16 }
  0x38   : > { %v168_v9 = vld [vmem:[%s141_s6 + $0x38] sm:$0xff]  ;;  %170 = vadd.xlane.f32.xlu0 %v169_v3  ;;  %v172_v10 = vadd.f32 %v164_v6, %v163_v5  ;;  %v187_v17 = vld [vmem:[%s615_s1 + $0x10] sm:$0xff]  ;;  %v186_v18 = vld [vmem:[%s615_s1 + $0x8] sm:$0xff]  ;;  %p377_p11 = scmp.ne.s32.totalorder %s223_s19, %s376_s29  ;;  %p625_p12 = scmp.ne.s32.totalorder %s621_s21, 0 }
  0x39   : > { %176 = vadd.xlane.f32.xlu1 %v175_v7  ;;  %v178_v11 = vadd.f32 %v168_v9, %v167_v8  ;;  %v188_v22 = vld [vmem:[%s615_s1 + $0x18] sm:$0xff]  ;;  %s445_s5 = smov [#allocation5]  }
  0x3a   : > { %p378_p13 = pnand %p377_p11, %p625_p12  ;;  %s380_s6 = sshll.u32 %s445_s5, 4  ;;  %s381_s6 = int_to_ptr.vmem [resolvable:$false] %s380_s6 }
  0x3b   : > { %s382_s13 = scalar_lea.vmem %s381_s6, 32  ;;  %p383_p5 = scmp.lt.s32.totalorder %s223_s19, %s381_s6 }
  0x3c   : > { %173 = vadd.xlane.f32.xlu0 %v172_v10  ;;  %p379_p4 = pneg %p378_p13  ;;  %p384_p7 = scmp.lt.s32.totalorder %s382_s13, %s376_s29 }
  0x3d   : > { %179 = vadd.xlane.f32.xlu1 %v178_v11 }
  0x3e   : > { %p385_p8 = por %p384_p7, %p383_p5 }
  0x40   : > { %p386_p10 = pnand %p385_p8, %p379_p4 }
  0xc1   : > { %v171_v12 = vpop.xlane.xlu0 %170 }
  0xc2   : > { %v181_v13 = vmul.f32 0.00390625, %v171_v12  ;;  %v177_v14 = vpop.xlane.xlu1 %176 }
  0xc3   : > { %v183_v16 = vmul.f32 0.00390625, %v177_v14 }
  0xc4   : > { %v189_v20 = vmul.f32 %v185_v15, %v181_v13 }
  0xc5   : > { %v174_v19 = vpop.xlane.xlu0 %173  ;;  %v191_v25 = vmul.f32 %v187_v17, %v183_v16 }
  0xc6   : > { %v182_v21 = vmul.f32 0.00390625, %v174_v19  ;;  %v180_v23 = vpop.xlane.xlu1 %179  ;;  %v194_v28 = vsel %vm193_vm0, %v189_v20, 0.0 }
  0xc7   : > { %v184_v24 = vmul.f32 0.00390625, %v180_v23  ;;  %v197_v31 = vsel %vm193_vm0, %v191_v25, 0.0 }
  0xc8   : > { %v190_v26 = vmul.f32 %v186_v18, %v182_v21 }
  0xc9   : > { %v192_v27 = vmul.f32 %v188_v22, %v184_v24 }
  0xca   : > { %v195_v29 = vsel %vm193_vm0, %v190_v26, 0.0 }
  0xcb   : > { %v196_v30 = vadd.f32 %v195_v29, %v194_v28  ;;  %v199_v32 = vsel %vm193_vm0, %v192_v27, 0.0 }
  0xcd   : > { %v198_v33 = vadd.f32 %v197_v31, %v196_v30 }
  0xcf   : > { %v200_v34 = vadd.f32 %v199_v32, %v198_v33 }
  0xd1   : > { %v201_v35 = vrot.slane %v200_v34, 4 }
  0xd3   : > { %v202_v36 = vadd.f32 %v201_v35, %v200_v34 }
  0xd5   : > { %v203_v37 = vrot.slane %v202_v36, 2 }
  0xd7   : > { %v204_v38 = vadd.f32 %v203_v37, %v202_v36 }
  0xd9   : > { %v205_v39 = vrot.slane %v204_v38, 1 }
  0xdb   : > { %v206_v40 = vadd.f32 %v205_v39, %v204_v38 }
  0xdd   : > { %208 = vst.msk [vmem:[%s160_s17] sm:$0x1] %vm207_vm1, %v206_v40 }
  0xde   : > { %389 = shalt.err (!%p386_p10)
}
  0xdf   : > { %s390_s20 = scalar_lea.hbm %s220_s25, 16  ;;  %s394_s30 = scalar_lea.hbm %s616_s2, 32 }
  0xe0   : > { %p391_p0 = scmp.ne.s32.totalorder %s220_s25, %s390_s20  ;;  %p395_p1 = scmp.lt.s32.totalorder %s220_s25, %s616_s2 }
  0xe1   : > { %p396_p3 = scmp.lt.s32.totalorder %s394_s30, %s390_s20 }
  0xe2   : > { %p392_p2 = pnand %p391_p0, %p625_p12 }
  0xe3   : > { %p397_p6 = por %p396_p3, %p395_p1 }
  0xe4   : > { %p393_p9 = pneg %p392_p2 }
  0xe6   : > { %p398_p11 = pnand %p397_p6, %p393_p9 }
  0xe8   : > { %401 = shalt.err (!%p398_p11)
}
  0xe9   : > { %302 = dma.vmem_to_hbm [thread:$0]  (%p625_p12), %s223_s19, 16, %s220_s25, %s210_s26  }
  0xea PF: > { %s234_s7 = sand.u32 1, %s428_s9   ;;  %p626_p13 = scmp.ne.s32.totalorder %s622_s22, 0 }
  0xeb   : > { %p627_p4 = scmp.ge.s32.totalorder %s440_s12, 2  ;;  %s235_s8 = scalar_lea.sflag [#allocation4], %s234_s7 }
  0xed   : > { %p309_p5 = pnand %p627_p4, %p626_p13 }
  0xef   : > { %p310_p7 = pneg %p309_p5 }
  0xf1   : > { %423 = dma.done.wait (%p310_p7), %s235_s8, 16  }
  0xf2   : > { %425 = vsyncadd (%p310_p7), %s235_s8, 4294967280  ;;  %p15_p8 = scmp.ge.s32.totalorder %s486_s15, 4   ;;  %s628_s9 = smov %s432_s10 }
  0xf3   : > { %s629_s10 = smov %s436_s11  ;;  %s630_s11 = smov %s498_s18 }
  0xf4   : > { %s631_s12 = smov %s486_s15  ;;  %17 = sbr.rel (!%p15_p8) target bundleno = 5 (0x5), region = 73 }
  0xf9   :  { %239 = vsyncpa [#allocation3], 1 }
  0xfa   :  { %241 = vsyncpa [#allocation3 + $0x1], 1 }
  0xfb   :  { %242 = vsyncpa [#allocation4], 1 }
  0xfc   :  { %244 = vsyncpa [#allocation4 + $0x1], 1 }

</bundles_post_ra>
